<compile_context>
chip_gen: v7x
topology: tpu7x:2x2x1
jax: 0.10.0
libtpu: 0.0.40
codegen_flags: <defaults>
</compile_context>

<pallas_src>
import functools

import jax
import jax.numpy as jnp
import numpy as np
from jax import lax
from jax.experimental import pallas as pl
from jax.experimental.pallas import tpu as pltpu

BN_EPS = 1e-5


def _bottleneck_kernel(x_ref, w1_ref, b1_ref, w2_ref, b2_ref, w3_ref, b3_ref,
                       out_ref, ybuf_ref, patch_ref, *, height, width):
    hw = height * width
    p = w1_ref.shape[0]                         # planes
    pad = width + 1
    bf16 = jnp.bfloat16

    # ---- conv1 (1x1) + folded-bn1 bias + relu : single bf16 MXU matmul ----
    y1 = jnp.dot(w1_ref[...], x_ref[0].astype(bf16),
                 preferred_element_type=jnp.float32)            # (P, HW) f32
    y1 = jnp.maximum(y1 + b1_ref[...], 0.0)

    # ---- conv2 (3x3, pad=1, stride=1) + folded-bn2 bias + relu ----
    # Stage y1 (bf16) into a lane-padded scratch so each of the 9 taps is a
    # cheap static lane-shifted read. Only the two small pad strips are zeroed
    # each step (2*(W+1) lanes), not the whole buffer; the interior is fully
    # overwritten by y1. Kept unconditional so it is megacore-safe.
    ybuf_ref[:, :pad] = jnp.zeros((p, pad), bf16)
    ybuf_ref[:, pad + hw:] = jnp.zeros((p, pad), bf16)
    ybuf_ref[:, pad:pad + hw] = y1.astype(bf16)

    # Column-edge masks only (the W+1 zero pad already zeroes the out-of-range
    # rows for dh = +-1, so no h-bound masks / no integer div needed). Computed
    # and broadcast once per step, reused by the three dw=-1 / dw=+1 taps.
    col = lax.broadcasted_iota(jnp.int32, (1, hw), 1) % width
    not_left = jnp.broadcast_to(col > 0, (p, hw))
    not_right = jnp.broadcast_to(col < (width - 1), (p, hw))

    t = 0
    for dh in (-1, 0, 1):
        for dw in (-1, 0, 1):
            d = dh * width + dw
            tap = ybuf_ref[:, pad + d:pad + d + hw]             # (P, HW) bf16
            if dw == -1:
                tap = jnp.where(not_left, tap, jnp.zeros_like(tap))
            elif dw == 1:
                tap = jnp.where(not_right, tap, jnp.zeros_like(tap))
            patch_ref[t * p:(t + 1) * p, :] = tap
            t += 1

    y2 = jnp.dot(w2_ref[...], patch_ref[...],
                 preferred_element_type=jnp.float32)            # (P, HW) f32
    y2 = jnp.maximum(y2 + b2_ref[...], 0.0)

    # ---- conv3 (1x1) + folded-bn3 bias + residual add + relu ----
    y3 = jnp.dot(w3_ref[...], y2.astype(bf16),
                 preferred_element_type=jnp.float32)            # (Cout, HW) f32
    # Re-read the residual from the ref (fresh load in the epilogue) instead of
    # keeping the (Cin, HW) value live across all three matmuls.
    out_ref[0] = jnp.maximum(y3 + b3_ref[...] + x_ref[0], 0.0)


def _vmem_limit_bytes():
    # Re-derive per chip generation: v5e/v6e have 128 MiB VMEM, v7x only 64 MiB.
    cap = None
    try:
        info = pltpu.get_tpu_info()
        for name in ("vmem_capacity_bytes", "vmem_bytes", "vmem_size_bytes"):
            cap = getattr(info, name, None)
            if cap:
                break
    except Exception:
        cap = None
    if not cap:
        cap = 128 * 1024 * 1024
    return int(min(64 * 1024 * 1024, (3 * int(cap)) // 4))


def bottleneck_pallas(x_nchw, params):
    n, cin, h, w = x_nchw.shape
    hw = h * w
    w1m, b1, w2m, b2, w3m, b3 = params
    p = w1m.shape[0]
    cout = w3m.shape[0]
    assert cout == cin, "identity residual requires inplanes == planes * 4"
    # Sublane-aligned tap stores into patch_ref (bf16 prefers multiples of 16;
    # real ResNet sizes P=64..512 satisfy this).
    assert p % 8 == 0, "planes must be a multiple of 8"
    # TODO(synk): pad planes in pack_params instead of asserting for odd sizes.

    x2 = x_nchw.reshape(n, cin, hw)             # contiguous NCHW -> free reshape

    kernel = functools.partial(_bottleneck_kernel, height=h, width=w)

    flops = 2 * n * hw * (cin * p + 9 * p * p + p * cout)
    bytes_accessed = 4 * (n * cin * hw + n * cout * hw) + sum(
        int(np.prod(a.shape)) * jnp.dtype(a.dtype).itemsize for a in params)

    full = lambda shape: pl.BlockSpec(shape, lambda b: (0,) * len(shape))
    out = pl.pallas_call(
        kernel,
        out_shape=jax.ShapeDtypeStruct((n, cout, hw), jnp.float32),
        grid=(n,),
        in_specs=[
            pl.BlockSpec((1, cin, hw), lambda b: (b, 0, 0)),   # x (f32, lane-dense)
            full((p, cin)),                                    # w1 (bf16, bn1-folded)
            full((p, 1)),                                      # bn1 bias (f32)
            full((p, 9 * p)),                                  # w2 (bf16, 9 taps on K)
            full((p, 1)),                                      # bn2 bias (f32)
            full((cout, p)),                                   # w3 (bf16, bn3-folded)
            full((cout, 1)),                                   # bn3 bias (f32)
        ],
        out_specs=pl.BlockSpec((1, cout, hw), lambda b: (b, 0, 0)),
        scratch_shapes=[
            pltpu.VMEM((p, hw + 2 * (w + 1)), jnp.bfloat16),   # lane-padded y1 staging
            pltpu.VMEM((9 * p, hw), jnp.bfloat16),             # fused patch matrix
        ],
        compiler_params=pltpu.CompilerParams(
            dimension_semantics=("parallel",),
            vmem_limit_bytes=_vmem_limit_bytes()),
        cost_estimate=pl.CostEstimate(flops=flops, transcendentals=0,
                                      bytes_accessed=bytes_accessed),
    )(x2, w1m, b1, w2m, b2, w3m, b3)
    return out.reshape(n, cout, h, w)


@jax.jit
def bottleneck_forward(x_nchw, *params):
    # PyTorch-facing wrapper: NCHW in / NCHW out (reshape only, no transposes).
    return bottleneck_pallas(x_nchw, params)


# ---------------- parameter construction (deterministic) ----------------
def fold_bn(gamma, beta, mean, var):
    scale = gamma / jnp.sqrt(var + BN_EPS)
    bias = beta - mean * scale
    return scale, bias


def make_params(key, inplanes, planes):
    ks = jax.random.split(key, 6)
    cout = planes * 4

    def conv_init(k, shape, fan_in):
        return jax.random.normal(k, shape, jnp.float32) * (1.0 / np.sqrt(fan_in))

    w1 = conv_init(ks[0], (inplanes, planes), inplanes)      # 1x1: (Cin, P)
    w2 = conv_init(ks[1], (9, planes, planes), 9 * planes)   # 3x3: (tap, Pin, Pout)
    w3 = conv_init(ks[2], (planes, cout), planes)            # 1x1: (P, 4P)

    def bn_init(k, c):
        kk = jax.random.split(k, 4)
        gamma = 0.5 + jax.random.uniform(kk[0], (c,), jnp.float32)
        beta = jax.random.normal(kk[1], (c,), jnp.float32) * 0.1
        mean = jax.random.normal(kk[2], (c,), jnp.float32) * 0.1
        var = 0.5 + jax.random.uniform(kk[3], (c,), jnp.float32)
        return fold_bn(gamma, beta, mean, var)

    s1, b1 = bn_init(ks[3], planes)
    s2, b2 = bn_init(ks[4], planes)
    s3, b3 = bn_init(ks[5], cout)
    return (w1, w2, w3, s1, b1, s2, b2, s3, b3)


def pack_params(base):
    """Fold BN scales into the conv weights and pack to (Cout x K) bf16 matrices."""
    w1, w2, w3, s1, b1, s2, b2, s3, b3 = base
    p = w1.shape[1]
    w1m = (w1.T * s1[:, None]).astype(jnp.bfloat16)                       # (P, Cin)
    w2m = (jnp.transpose(w2, (2, 0, 1)).reshape(p, 9 * p)
           * s2[:, None]).astype(jnp.bfloat16)                            # (P, 9P)
    w3m = (w3.T * s3[:, None]).astype(jnp.bfloat16)                       # (Cout, P)
    col = lambda v: v.reshape(-1, 1).astype(jnp.float32)
    return (w1m, col(b1), w2m, col(b2), w3m, col(b3))


# ---------------- pure-JAX reference for verification ----------------
# Matches the kernel's quantization points exactly (BN scale folded into the
# weights, operands cast to bf16, f32 accumulation, bias/ReLU/residual in f32),
# so the comparison isolates kernel bugs rather than bf16 rounding.
def bottleneck_ref_nchw(x_nchw, base):
    w1, w2, w3, s1, b1, s2, b2, s3, b3 = base
    x = jnp.transpose(x_nchw, (0, 2, 3, 1)).astype(jnp.float32)  # NHWC
    dn = ('NHWC', 'HWIO', 'NHWC')

    def conv(v, k_hwio):
        return lax.conv_general_dilated(
            v.astype(jnp.bfloat16), k_hwio.astype(jnp.bfloat16), (1, 1), 'SAME',
            dimension_numbers=dn, preferred_element_type=jnp.float32)

    def bias(v, b):
        return v + b.reshape(1, 1, 1, -1)

    p = w1.shape[1]
    k1 = (w1 * s1[None, :]).reshape(1, 1, *w1.shape)
    k2 = (w2 * s2[None, None, :]).reshape(3, 3, p, p)
    k3 = (w3 * s3[None, :]).reshape(1, 1, *w3.shape)

    y = jnp.maximum(bias(conv(x, k1), b1), 0.0)
    y = jnp.maximum(bias(conv(y, k2), b2), 0.0)
    y = bias(conv(y, k3), b3)
    y = jnp.maximum(y + x, 0.0)
    return jnp.transpose(y, (0, 3, 1, 2))


if __name__ == "__main__":
    key = jax.random.PRNGKey(0)
    k_x, k_p = jax.random.split(key)

    # Small Bottleneck: planes=16 -> inplanes = out channels = 64 (identity residual);
    # planes is a multiple of 16 so bf16 tap stores are sublane-tile aligned.
    N, planes, H, W = 2, 16, 16, 16
    inplanes = planes * 4

    x = jax.random.normal(k_x, (N, inplanes, H, W), jnp.float32)   # NCHW like PyTorch
    base = make_params(k_p, inplanes, planes)
    kparams = pack_params(base)

    out = bottleneck_forward(x, *kparams)
    out = jax.block_until_ready(out)

    ref = bottleneck_ref_nchw(x, base)
    np.testing.assert_allclose(np.asarray(out), np.asarray(ref), rtol=1e-3, atol=1e-3)

    print("KERNEL_OK")
</pallas_src>

<mosaic_0001>
module attributes {stable_mosaic.version = 11 : i64} {
  func.func @_bottleneck_kernel(%arg0: i32, %arg1: memref<1x64x256xf32, #tpu.memory_space<vmem>>, %arg2: memref<16x64xbf16, #tpu.memory_space<vmem>>, %arg3: memref<16x1xf32, #tpu.memory_space<vmem>>, %arg4: memref<16x144xbf16, #tpu.memory_space<vmem>>, %arg5: memref<16x1xf32, #tpu.memory_space<vmem>>, %arg6: memref<64x16xbf16, #tpu.memory_space<vmem>>, %arg7: memref<64x1xf32, #tpu.memory_space<vmem>>, %arg8: memref<1x64x256xf32, #tpu.memory_space<vmem>>, %arg9: memref<16x290xbf16, #tpu.memory_space<vmem>>, %arg10: memref<144x256xbf16, #tpu.memory_space<vmem>>) attributes {dimension_semantics = [#tpu.dimension_semantics<parallel>], iteration_bounds = array<i64: 2>, scalar_prefetch = 0 : i64, scratch_operands = 2 : i64, tpu.core_type = #tpu.core_type<tc>, window_params = [{transform_indices = @transform_0, window_bounds = array<i64: 1, 64, 256>}, {pipeline_mode = #tpu.pipeline_mode<synchronous>, transform_indices = @transform_1, window_bounds = array<i64: 16, 64>}, {pipeline_mode = #tpu.pipeline_mode<synchronous>, transform_indices = @transform_2, window_bounds = array<i64: 16, 1>}, {pipeline_mode = #tpu.pipeline_mode<synchronous>, transform_indices = @transform_3, window_bounds = array<i64: 16, 144>}, {pipeline_mode = #tpu.pipeline_mode<synchronous>, transform_indices = @transform_4, window_bounds = array<i64: 16, 1>}, {pipeline_mode = #tpu.pipeline_mode<synchronous>, transform_indices = @transform_5, window_bounds = array<i64: 64, 16>}, {pipeline_mode = #tpu.pipeline_mode<synchronous>, transform_indices = @transform_6, window_bounds = array<i64: 64, 1>}, {transform_indices = @transform_7, window_bounds = array<i64: 1, 64, 256>}]} {
    %c0 = arith.constant 0 : index
    %c0_0 = arith.constant 0 : index
    %0 = vector.load %arg2[%c0, %c0_0] : memref<16x64xbf16, #tpu.memory_space<vmem>>, vector<16x64xbf16>
    %c0_1 = arith.constant 0 : index
    %c0_2 = arith.constant 0 : index
    %c0_3 = arith.constant 0 : index
    %1 = vector.load %arg1[%c0_1, %c0_2, %c0_3] : memref<1x64x256xf32, #tpu.memory_space<vmem>>, vector<1x64x256xf32>
    %2 = vector.shape_cast %1 : vector<1x64x256xf32> to vector<64x256xf32>
    %3 = arith.truncf %2 : vector<64x256xf32> to vector<64x256xbf16>
    %cst = arith.constant dense<0.000000e+00> : vector<16x256xf32>
    %4 = tpu.matmul %0, %3, %cst {dimension_numbers = #tpu.dot_dimension_numbers<[1], [0], [0], [1], [0, 0, 1, 1], [], []>} : vector<16x64xbf16>, vector<64x256xbf16>, vector<16x256xf32> -> vector<16x256xf32>
    %c0_4 = arith.constant 0 : index
    %c0_5 = arith.constant 0 : index
    %5 = vector.load %arg3[%c0_4, %c0_5] : memref<16x1xf32, #tpu.memory_space<vmem>>, vector<16x1xf32>
    %6 = vector.broadcast %5 : vector<16x1xf32> to vector<16x256xf32>
    %7 = arith.addf %4, %6 : vector<16x256xf32>
    %cst_6 = arith.constant 0.000000e+00 : f32
    %8 = vector.broadcast %cst_6 : f32 to vector<16x256xf32>
    %9 = arith.maximumf %7, %8 : vector<16x256xf32>
    %cst_7 = arith.constant 0.000000e+00 : bf16
    %10 = vector.broadcast %cst_7 : bf16 to vector<16x17xbf16>
    %c0_8 = arith.constant 0 : index
    %c0_9 = arith.constant 0 : index
    %11 = vector.load %arg9[%c0_8, %c0_9] : memref<16x290xbf16, #tpu.memory_space<vmem>>, vector<16x17xbf16>
    tpu.vector_store %arg9[%c0_8, %c0_9], %10 {strides = array<i32>} : memref<16x290xbf16, #tpu.memory_space<vmem>>, vector<16x17xbf16>,
    %cst_10 = arith.constant 0.000000e+00 : bf16
    %12 = vector.broadcast %cst_10 : bf16 to vector<16x17xbf16>
    %c0_11 = arith.constant 0 : index
    %c273 = arith.constant 273 : index
    %13 = vector.load %arg9[%c0_11, %c273] : memref<16x290xbf16, #tpu.memory_space<vmem>>, vector<16x17xbf16>
    tpu.vector_store %arg9[%c0_11, %c273], %12 {strides = array<i32>} : memref<16x290xbf16, #tpu.memory_space<vmem>>, vector<16x17xbf16>,
    %14 = arith.truncf %9 : vector<16x256xf32> to vector<16x256xbf16>
    %c0_12 = arith.constant 0 : index
    %c17 = arith.constant 17 : index
    %15 = vector.load %arg9[%c0_12, %c17] : memref<16x290xbf16, #tpu.memory_space<vmem>>, vector<16x256xbf16>
    tpu.vector_store %arg9[%c0_12, %c17], %14 {strides = array<i32>} : memref<16x290xbf16, #tpu.memory_space<vmem>>, vector<16x256xbf16>,
    %16 = tpu.iota {dimensions = array<i32: 1>} : vector<1x256xi32>
    %c16_i32 = arith.constant 16 : i32
    %c0_i32 = arith.constant 0 : i32
    %17 = arith.cmpi eq, %c16_i32, %c0_i32 : i32
    %c1_i32 = arith.constant 1 : i32
    %18 = arith.select %17, %c1_i32, %c16_i32 : i32
    %19 = vector.broadcast %18 : i32 to vector<1x256xi32>
    %20 = arith.remsi %16, %19 : vector<1x256xi32>
    %c0_i32_13 = arith.constant 0 : i32
    %21 = vector.broadcast %c0_i32_13 : i32 to vector<1x256xi32>
    %22 = arith.cmpi ne, %20, %21 : vector<1x256xi32>
    %c0_i32_14 = arith.constant 0 : i32
    %23 = vector.broadcast %c0_i32_14 : i32 to vector<1x256xi32>
    %24 = arith.cmpi slt, %20, %23 : vector<1x256xi32>
    %c0_i32_15 = arith.constant 0 : i32
    %25 = arith.cmpi slt, %18, %c0_i32_15 : i32
    %26 = vector.broadcast %25 : i1 to vector<1x256xi1>
    %27 = vector.broadcast %26 : vector<1x256xi1> to vector<1x256xi1>
    %28 = arith.xori %24, %27 : vector<1x256xi1>
    %29 = arith.andi %28, %22 : vector<1x256xi1>
    %30 = vector.broadcast %18 : i32 to vector<1x256xi32>
    %31 = arith.addi %20, %30 : vector<1x256xi32>
    %32 = arith.select %29, %31, %20 : vector<1x256xi1>, vector<1x256xi32>
    %c0_i32_16 = arith.constant 0 : i32
    %33 = vector.broadcast %c0_i32_16 : i32 to vector<1x256xi32>
    %34 = arith.cmpi sgt, %32, %33 : vector<1x256xi32>
    %35 = vector.shape_cast %34 : vector<1x256xi1> to vector<1x256xi1>
    %36 = vector.broadcast %35 : vector<1x256xi1> to vector<16x256xi1>
    %c15_i32 = arith.constant 15 : i32
    %37 = vector.broadcast %c15_i32 : i32 to vector<1x256xi32>
    %38 = arith.cmpi slt, %32, %37 : vector<1x256xi32>
    %39 = vector.shape_cast %38 : vector<1x256xi1> to vector<1x256xi1>
    %40 = vector.broadcast %39 : vector<1x256xi1> to vector<16x256xi1>
    %c0_17 = arith.constant 0 : index
    %c0_18 = arith.constant 0 : index
    %41 = vector.load %arg9[%c0_17, %c0_18] : memref<16x290xbf16, #tpu.memory_space<vmem>>, vector<16x256xbf16>
    %cst_19 = arith.constant 0.000000e+00 : bf16
    %42 = vector.broadcast %cst_19 : bf16 to vector<16x256xbf16>
    %43 = arith.select %36, %41, %42 : vector<16x256xi1>, vector<16x256xbf16>
    %c0_20 = arith.constant 0 : index
    %c0_21 = arith.constant 0 : index
    %44 = vector.load %arg10[%c0_20, %c0_21] : memref<144x256xbf16, #tpu.memory_space<vmem>>, vector<16x256xbf16>
    tpu.vector_store %arg10[%c0_20, %c0_21], %43 {strides = array<i32>} : memref<144x256xbf16, #tpu.memory_space<vmem>>, vector<16x256xbf16>,
    %c0_22 = arith.constant 0 : index
    %c1 = arith.constant 1 : index
    %45 = vector.load %arg9[%c0_22, %c1] : memref<16x290xbf16, #tpu.memory_space<vmem>>, vector<16x256xbf16>
    %c16 = arith.constant 16 : index
    %c0_23 = arith.constant 0 : index
    %46 = vector.load %arg10[%c16, %c0_23] : memref<144x256xbf16, #tpu.memory_space<vmem>>, vector<16x256xbf16>
    tpu.vector_store %arg10[%c16, %c0_23], %45 {strides = array<i32>} : memref<144x256xbf16, #tpu.memory_space<vmem>>, vector<16x256xbf16>,
    %c0_24 = arith.constant 0 : index
    %c2 = arith.constant 2 : index
    %47 = vector.load %arg9[%c0_24, %c2] : memref<16x290xbf16, #tpu.memory_space<vmem>>, vector<16x256xbf16>
    %cst_25 = arith.constant 0.000000e+00 : bf16
    %48 = vector.broadcast %cst_25 : bf16 to vector<16x256xbf16>
    %49 = arith.select %40, %47, %48 : vector<16x256xi1>, vector<16x256xbf16>
    %c32 = arith.constant 32 : index
    %c0_26 = arith.constant 0 : index
    %50 = vector.load %arg10[%c32, %c0_26] : memref<144x256xbf16, #tpu.memory_space<vmem>>, vector<16x256xbf16>
    tpu.vector_store %arg10[%c32, %c0_26], %49 {strides = array<i32>} : memref<144x256xbf16, #tpu.memory_space<vmem>>, vector<16x256xbf16>,
    %c0_27 = arith.constant 0 : index
    %c16_28 = arith.constant 16 : index
    %51 = vector.load %arg9[%c0_27, %c16_28] : memref<16x290xbf16, #tpu.memory_space<vmem>>, vector<16x256xbf16>
    %cst_29 = arith.constant 0.000000e+00 : bf16
    %52 = vector.broadcast %cst_29 : bf16 to vector<16x256xbf16>
    %53 = arith.select %36, %51, %52 : vector<16x256xi1>, vector<16x256xbf16>
    %c48 = arith.constant 48 : index
    %c0_30 = arith.constant 0 : index
    %54 = vector.load %arg10[%c48, %c0_30] : memref<144x256xbf16, #tpu.memory_space<vmem>>, vector<16x256xbf16>
    tpu.vector_store %arg10[%c48, %c0_30], %53 {strides = array<i32>} : memref<144x256xbf16, #tpu.memory_space<vmem>>, vector<16x256xbf16>,
    %c0_31 = arith.constant 0 : index
    %c17_32 = arith.constant 17 : index
    %55 = vector.load %arg9[%c0_31, %c17_32] : memref<16x290xbf16, #tpu.memory_space<vmem>>, vector<16x256xbf16>
    %c64 = arith.constant 64 : index
    %c0_33 = arith.constant 0 : index
    %56 = vector.load %arg10[%c64, %c0_33] : memref<144x256xbf16, #tpu.memory_space<vmem>>, vector<16x256xbf16>
    tpu.vector_store %arg10[%c64, %c0_33], %55 {strides = array<i32>} : memref<144x256xbf16, #tpu.memory_space<vmem>>, vector<16x256xbf16>,
    %c0_34 = arith.constant 0 : index
    %c18 = arith.constant 18 : index
    %57 = vector.load %arg9[%c0_34, %c18] : memref<16x290xbf16, #tpu.memory_space<vmem>>, vector<16x256xbf16>
    %cst_35 = arith.constant 0.000000e+00 : bf16
    %58 = vector.broadcast %cst_35 : bf16 to vector<16x256xbf16>
    %59 = arith.select %40, %57, %58 : vector<16x256xi1>, vector<16x256xbf16>
    %c80 = arith.constant 80 : index
    %c0_36 = arith.constant 0 : index
    %60 = vector.load %arg10[%c80, %c0_36] : memref<144x256xbf16, #tpu.memory_space<vmem>>, vector<16x256xbf16>
    tpu.vector_store %arg10[%c80, %c0_36], %59 {strides = array<i32>} : memref<144x256xbf16, #tpu.memory_space<vmem>>, vector<16x256xbf16>,
    %c0_37 = arith.constant 0 : index
    %c32_38 = arith.constant 32 : index
    %61 = vector.load %arg9[%c0_37, %c32_38] : memref<16x290xbf16, #tpu.memory_space<vmem>>, vector<16x256xbf16>
    %cst_39 = arith.constant 0.000000e+00 : bf16
    %62 = vector.broadcast %cst_39 : bf16 to vector<16x256xbf16>
    %63 = arith.select %36, %61, %62 : vector<16x256xi1>, vector<16x256xbf16>
    %c96 = arith.constant 96 : index
    %c0_40 = arith.constant 0 : index
    %64 = vector.load %arg10[%c96, %c0_40] : memref<144x256xbf16, #tpu.memory_space<vmem>>, vector<16x256xbf16>
    tpu.vector_store %arg10[%c96, %c0_40], %63 {strides = array<i32>} : memref<144x256xbf16, #tpu.memory_space<vmem>>, vector<16x256xbf16>,
    %c0_41 = arith.constant 0 : index
    %c33 = arith.constant 33 : index
    %65 = vector.load %arg9[%c0_41, %c33] : memref<16x290xbf16, #tpu.memory_space<vmem>>, vector<16x256xbf16>
    %c112 = arith.constant 112 : index
    %c0_42 = arith.constant 0 : index
    %66 = vector.load %arg10[%c112, %c0_42] : memref<144x256xbf16, #tpu.memory_space<vmem>>, vector<16x256xbf16>
    tpu.vector_store %arg10[%c112, %c0_42], %65 {strides = array<i32>} : memref<144x256xbf16, #tpu.memory_space<vmem>>, vector<16x256xbf16>,
    %c0_43 = arith.constant 0 : index
    %c34 = arith.constant 34 : index
    %67 = vector.load %arg9[%c0_43, %c34] : memref<16x290xbf16, #tpu.memory_space<vmem>>, vector<16x256xbf16>
    %cst_44 = arith.constant 0.000000e+00 : bf16
    %68 = vector.broadcast %cst_44 : bf16 to vector<16x256xbf16>
    %69 = arith.select %40, %67, %68 : vector<16x256xi1>, vector<16x256xbf16>
    %c128 = arith.constant 128 : index
    %c0_45 = arith.constant 0 : index
    %70 = vector.load %arg10[%c128, %c0_45] : memref<144x256xbf16, #tpu.memory_space<vmem>>, vector<16x256xbf16>
    tpu.vector_store %arg10[%c128, %c0_45], %69 {strides = array<i32>} : memref<144x256xbf16, #tpu.memory_space<vmem>>, vector<16x256xbf16>,
    %c0_46 = arith.constant 0 : index
    %c0_47 = arith.constant 0 : index
    %71 = vector.load %arg4[%c0_46, %c0_47] : memref<16x144xbf16, #tpu.memory_space<vmem>>, vector<16x144xbf16>
    %c0_48 = arith.constant 0 : index
    %c0_49 = arith.constant 0 : index
    %72 = vector.load %arg10[%c0_48, %c0_49] : memref<144x256xbf16, #tpu.memory_space<vmem>>, vector<144x256xbf16>
    %cst_50 = arith.constant dense<0.000000e+00> : vector<16x256xf32>
    %73 = tpu.matmul %71, %72, %cst_50 {dimension_numbers = #tpu.dot_dimension_numbers<[1], [0], [0], [1], [0, 0, 1, 1], [], []>} : vector<16x144xbf16>, vector<144x256xbf16>, vector<16x256xf32> -> vector<16x256xf32>
    %c0_51 = arith.constant 0 : index
    %c0_52 = arith.constant 0 : index
    %74 = vector.load %arg5[%c0_51, %c0_52] : memref<16x1xf32, #tpu.memory_space<vmem>>, vector<16x1xf32>
    %75 = vector.broadcast %74 : vector<16x1xf32> to vector<16x256xf32>
    %76 = arith.addf %73, %75 : vector<16x256xf32>
    %cst_53 = arith.constant 0.000000e+00 : f32
    %77 = vector.broadcast %cst_53 : f32 to vector<16x256xf32>
    %78 = arith.maximumf %76, %77 : vector<16x256xf32>
    %c0_54 = arith.constant 0 : index
    %c0_55 = arith.constant 0 : index
    %79 = vector.load %arg6[%c0_54, %c0_55] : memref<64x16xbf16, #tpu.memory_space<vmem>>, vector<64x16xbf16>
    %80 = arith.truncf %78 : vector<16x256xf32> to vector<16x256xbf16>
    %cst_56 = arith.constant dense<0.000000e+00> : vector<64x256xf32>
    %81 = tpu.matmul %79, %80, %cst_56 {dimension_numbers = #tpu.dot_dimension_numbers<[1], [0], [0], [1], [0, 0, 1, 1], [], []>} : vector<64x16xbf16>, vector<16x256xbf16>, vector<64x256xf32> -> vector<64x256xf32>
    %c0_57 = arith.constant 0 : index
    %c0_58 = arith.constant 0 : index
    %82 = vector.load %arg7[%c0_57, %c0_58] : memref<64x1xf32, #tpu.memory_space<vmem>>, vector<64x1xf32>
    %83 = vector.broadcast %82 : vector<64x1xf32> to vector<64x256xf32>
    %84 = arith.addf %81, %83 : vector<64x256xf32>
    %c0_59 = arith.constant 0 : index
    %c0_60 = arith.constant 0 : index
    %c0_61 = arith.constant 0 : index
    %85 = vector.load %arg1[%c0_59, %c0_60, %c0_61] : memref<1x64x256xf32, #tpu.memory_space<vmem>>, vector<1x64x256xf32>
    %86 = vector.shape_cast %85 : vector<1x64x256xf32> to vector<64x256xf32>
    %87 = arith.addf %84, %86 : vector<64x256xf32>
    %cst_62 = arith.constant 0.000000e+00 : f32
    %88 = vector.broadcast %cst_62 : f32 to vector<64x256xf32>
    %89 = arith.maximumf %87, %88 : vector<64x256xf32>
    %c0_63 = arith.constant 0 : index
    %c0_64 = arith.constant 0 : index
    %c0_65 = arith.constant 0 : index
    %90 = vector.load %arg8[%c0_63, %c0_64, %c0_65] : memref<1x64x256xf32, #tpu.memory_space<vmem>>, vector<1x64x256xf32>
    %91 = vector.shape_cast %90 : vector<1x64x256xf32> to vector<64x256xf32>
    %92 = vector.shape_cast %89 : vector<64x256xf32> to vector<1x64x256xf32>
    tpu.vector_store %arg8[%c0_63, %c0_64, %c0_65], %92 {strides = array<i32>} : memref<1x64x256xf32, #tpu.memory_space<vmem>>, vector<1x64x256xf32>,
    return
  }
  func.func @transform_0(%arg0: i32) -> (i32, i32, i32) {
    %c0_i32 = arith.constant 0 : i32
    %c0_i32_0 = arith.constant 0 : i32
    %c0_i32_1 = arith.constant 0 : i32
    return %arg0, %c0_i32, %c0_i32_0 : i32, i32, i32
  }
  func.func @transform_1(%arg0: i32) -> (i32, i32) {
    %c0_i32 = arith.constant 0 : i32
    %c0_i32_0 = arith.constant 0 : i32
    %c0_i32_1 = arith.constant 0 : i32
    return %c0_i32, %c0_i32_0 : i32, i32
  }
  func.func @transform_2(%arg0: i32) -> (i32, i32) {
    %c0_i32 = arith.constant 0 : i32
    %c0_i32_0 = arith.constant 0 : i32
    %c0_i32_1 = arith.constant 0 : i32
    return %c0_i32, %c0_i32_0 : i32, i32
  }
  func.func @transform_3(%arg0: i32) -> (i32, i32) {
    %c0_i32 = arith.constant 0 : i32
    %c0_i32_0 = arith.constant 0 : i32
    %c0_i32_1 = arith.constant 0 : i32
    return %c0_i32, %c0_i32_0 : i32, i32
  }
  func.func @transform_4(%arg0: i32) -> (i32, i32) {
    %c0_i32 = arith.constant 0 : i32
    %c0_i32_0 = arith.constant 0 : i32
    %c0_i32_1 = arith.constant 0 : i32
    return %c0_i32, %c0_i32_0 : i32, i32
  }
  func.func @transform_5(%arg0: i32) -> (i32, i32) {
    %c0_i32 = arith.constant 0 : i32
    %c0_i32_0 = arith.constant 0 : i32
    %c0_i32_1 = arith.constant 0 : i32
    return %c0_i32, %c0_i32_0 : i32, i32
  }
  func.func @transform_6(%arg0: i32) -> (i32, i32) {
    %c0_i32 = arith.constant 0 : i32
    %c0_i32_0 = arith.constant 0 : i32
    %c0_i32_1 = arith.constant 0 : i32
    return %c0_i32, %c0_i32_0 : i32, i32
  }
  func.func @transform_7(%arg0: i32) -> (i32, i32, i32) {
    %c0_i32 = arith.constant 0 : i32
    %c0_i32_0 = arith.constant 0 : i32
    %c0_i32_1 = arith.constant 0 : i32
    return %arg0, %c0_i32, %c0_i32_0 : i32, i32, i32
  }
}

</mosaic_0001>

<bundles_post_ra>
// kernel: bottleneck_forward.1
= control target key start
LH: loop header
LB: loop body
LE: loop exit
PB: predicated region body
PF: predicated region fallthrough
CT: control target
= control target key end

     0   :  { %12 = vsyncpa [#allocation5], 0  ;;  %s2283_s0 = inlined_call_operand.hbm [shape: f32[2,64,256], index: 0, kind: input, shape index: {}]   ;;  %s2284_s1 = inlined_call_operand.hbm [shape: bf16[16,64], index: 1, kind: input, shape index: {}]   ;;  %s2285_s2 = inlined_call_operand.hbm [shape: f32[16,1], index: 2, kind: input, shape index: {}]   ;;  %s2286_s3 = inlined_call_operand.hbm [shape: bf16[16,144], index: 3, kind: input, shape index: {}]   ;;  %s2287_s4 = inlined_call_operand.hbm [shape: f32[16,1], index: 4, kind: input, shape index: {}]   ;;  %s2288_s5 = inlined_call_operand.hbm [shape: bf16[64,16], index: 5, kind: input, shape index: {}]   ;;  %s2289_s6 = inlined_call_operand.hbm [shape: f32[64,1], index: 6, kind: input, shape index: {}]   ;;  %s2290_s7 = inlined_call_operand.hbm [shape: f32[2,64,256], index: 7, kind: output, shape index: {}]  }
   0x1   :  { %14 = vsyncpa [#allocation5 + $0x1], 0 }
   0x2   :  { %15 = vsyncpa [#allocation8], 0 }
   0x3   :  { %16 = vsyncpa [#allocation11], 0 }
   0x4   :  { %17 = vsyncpa [#allocation14], 0 }
   0x5   :  { %18 = vsyncpa [#allocation6], 0 }
   0x6   :  { %20 = vsyncpa [#allocation6 + $0x1], 0  ;;  %s1773_s24 = smov 0   ;;  %s1775_s25 = smov 0  }
   0x7   :  { %s1777_s26 = smov 0   ;;  %s1779_s27 = smov 0  }
   0x8 LB: > { %s1703_s28 = smov [#allocation7]   ;;  %s1794_s30 = sadd.s32 4294967295, %s1701_s27   ;;  %s1701_s27 = sphi %s1779_s27, %s2322_s27   ;;  %s1697_s26 = sphi %s1777_s26, %s2321_s26   ;;  %s1693_s25 = sphi %s1775_s25, %s2320_s25   ;;  %s1689_s24 = sphi %s1773_s24, %s2319_s24  }
   0x9   : > { %s221_s29 = sshll.u32 %s1703_s28, 4  ;;  %p1245_p0 = scmp.ge.s32.totalorder %s1701_s27, 1  ;;  %s1799_s29 = int_to_ptr.vmem [resolvable:$true] %s221_s29 }
   0xa   : > { %p2291_p1 = scmp.eq.s32.totalorder %s1794_s30, 0  ;;  %p209_p2 = scmp.lt.s32.totalorder %s1701_s27, 3 }
   0xb   : > { %s1704_s10 = smov [#allocation10]   ;;  %s1705_s12 = smov [#allocation13]  }
   0xc   : > { %p1801_p3 = pnand %p1245_p0, %p209_p2  ;;  %s247_s11 = sshll.u32 %s1704_s10, 4  ;;  %s1814_s11 = int_to_ptr.vmem [resolvable:$true] %s247_s11 }
   0xd   : > { %s1816_s13 = sshll.u32 %s1705_s12, 4  ;;  %s1425_s16 = scalar_lea.hbm %s2284_s1, 128  ;;  %s274_s13 = int_to_ptr.vmem [resolvable:$true] %s1816_s13 }
   0xe   : > { %s2298_s8 = scalar_select %p1801_p3, 1, 0 }
   0xf   : > { %p1314_p5 = pneg %p1801_p3  ;;  %p1426_p7 = scmp.ne.s32.totalorder %s2284_s1, %s1425_s16 }
  0x10   : > { %p1432_p11 = scmp.lt.u32.totalorder %s1425_s16, %s2284_s1 }
  0x11   : > { %p1810_p6 = pnand %p1314_p5, %p2291_p1 }
  0x13   : > { %p1826_p8 = pneg %p1810_p6 }
  0x15   : > { %p1428_p9 = pnand %p1826_p8, %p1426_p7 }
  0x17   : > { %p1429_p10 = pneg %p1428_p9 }
  0x19   : > { %p1434_p12 = pnand %p1432_p11, %p1429_p10 }
  0x1b   : > { %1437 = shalt.err (!%p1434_p12)
}
  0x1c   : > { %s1438_s22 = scalar_lea.vmem %s1799_s29, 128  ;;  %p1446_p5 = scmp.lt.s32.totalorder %s1799_s29, %s1799_s29 }
  0x1d   : > { %p1439_p13 = scmp.ne.s32.totalorder %s1799_s29, %s1438_s22  ;;  %p1447_p4 = scmp.lt.s32.totalorder %s1438_s22, %s1438_s22 }
  0x1f   : > { %p1441_p0 = pnand %p1439_p13, %p1826_p8  ;;  %p1448_p7 = por %p1447_p4, %p1446_p5 }
  0x21   : > { %p1442_p2 = pneg %p1441_p0 }
  0x23   : > { %p1449_p9 = pnand %p1448_p7, %p1442_p2 }
  0x25   : > { %1452 = shalt.err (!%p1449_p9)
}
  0x26   : > { %s1706_s23 = smov 64   ;;  %s1707_s28 = smov 4  }
  0x27   : > { %1317 = dma.hbm_to_vmem [thread:$0]  (!%p1810_p6), %s2284_s1, 128, %s1799_s29, [#allocation8], %s1706_s23, %s1706_s23, %s1707_s28  }
  0x28   : > { %s1453_s16 = scalar_lea.hbm %s2286_s3, 256 }
  0x29   : > { %p1454_p4 = scmp.ne.s32.totalorder %s2286_s3, %s1453_s16  ;;  %p1460_p12 = scmp.lt.u32.totalorder %s1453_s16, %s2286_s3 }
  0x2b   : > { %p1456_p10 = pnand %p1454_p4, %p1826_p8 }
  0x2d   : > { %p1457_p11 = pneg %p1456_p10 }
  0x2f   : > { %p1462_p13 = pnand %p1460_p12, %p1457_p11 }
  0x31   : > { %1465 = shalt.err (!%p1462_p13)
}
  0x32   : > { %s1466_s29 = scalar_lea.vmem %s1814_s11, 256  ;;  %p1474_p7 = scmp.lt.s32.totalorder %s1814_s11, %s1814_s11 }
  0x33   : > { %p1467_p0 = scmp.ne.s32.totalorder %s1814_s11, %s1466_s29  ;;  %p1475_p9 = scmp.lt.s32.totalorder %s1466_s29, %s1466_s29 }
  0x35   : > { %p1469_p2 = pnand %p1467_p0, %p1826_p8  ;;  %p1476_p4 = por %p1475_p9, %p1474_p7 }
  0x37   : > { %p1470_p5 = pneg %p1469_p2 }
  0x39   : > { %p1477_p10 = pnand %p1476_p4, %p1470_p5 }
  0x3b   : > { %1480 = shalt.err (!%p1477_p10)
}
  0x3c   : > { %s2293_s22 = smov 128   ;;  %s2295_s10 = smov 8  }
  0x3d   : > { %1323 = dma.hbm_to_vmem [thread:$0]  (!%p1810_p6), %s2286_s3, 256, %s1814_s11, [#allocation11], %s2293_s22, %s2293_s22, %s2295_s10  }
  0x3e   : > { %s1481_s17 = scalar_lea.hbm %s2288_s5, 512 }
  0x3f   : > { %p1482_p11 = scmp.ne.s32.totalorder %s2288_s5, %s1481_s17  ;;  %p1488_p0 = scmp.lt.u32.totalorder %s1481_s17, %s2288_s5 }
  0x41   : > { %p1484_p12 = pnand %p1482_p11, %p1826_p8 }
  0x43   : > { %p1485_p13 = pneg %p1484_p12 }
  0x45   : > { %p1490_p2 = pnand %p1488_p0, %p1485_p13 }
  0x47   : > { %1493 = shalt.err (!%p1490_p2)
}
  0x48   : > { %s1494_s12 = scalar_lea.vmem %s274_s13, 512  ;;  %p1502_p4 = scmp.lt.s32.totalorder %s274_s13, %s274_s13 }
  0x49   : > { %p1495_p5 = scmp.ne.s32.totalorder %s274_s13, %s1494_s12  ;;  %p1503_p10 = scmp.lt.s32.totalorder %s1494_s12, %s1494_s12 }
  0x4b   : > { %p1497_p7 = pnand %p1495_p5, %p1826_p8  ;;  %p1504_p1 = por %p1503_p10, %p1502_p4 }
  0x4d   : > { %p1498_p9 = pneg %p1497_p7 }
  0x4f   : > { %p1505_p3 = pnand %p1504_p1, %p1498_p9 }
  0x51   : > { %1508 = shalt.err (!%p1505_p3)
}
  0x52   : > { %1329 = dma.hbm_to_vmem [thread:$0]  (!%p1810_p6), %s2288_s5, 512, %s274_s13, [#allocation14], %s1706_s23, %s1706_s23, %s1707_s28  }
  0x53   : > { %s1710_s15 = smov [#allocation9]   ;;  %s1711_s17 = smov [#allocation12]  }
  0x54   : > { %s234_s16 = sshll.u32 %s1710_s15, 4  ;;  %s260_s18 = sshll.u32 %s1711_s17, 4  ;;  %s235_s16 = int_to_ptr.vmem [resolvable:$true] %s234_s16  ;;  %s261_s18 = int_to_ptr.vmem [resolvable:$true] %s260_s18 }
  0x55   : > { %s1509_s29 = scalar_lea.hbm %s2285_s2, 256 }
  0x56   : > { %p1510_p1 = scmp.ne.s32.totalorder %s2285_s2, %s1509_s29  ;;  %p1516_p12 = scmp.lt.u32.totalorder %s1509_s29, %s2285_s2 }
  0x58   : > { %p1512_p3 = pnand %p1510_p1, %p1826_p8 }
  0x5a   : > { %p1513_p11 = pneg %p1512_p3 }
  0x5c   : > { %p1518_p13 = pnand %p1516_p12, %p1513_p11 }
  0x5e   : > { %1521 = shalt.err (!%p1518_p13)
}
  0x5f   : > { %s1522_s13 = scalar_lea.vmem %s235_s16, 256  ;;  %p1530_p7 = scmp.lt.s32.totalorder %s235_s16, %s235_s16 }
  0x60   : > { %p1523_p0 = scmp.ne.s32.totalorder %s235_s16, %s1522_s13  ;;  %p1531_p9 = scmp.lt.s32.totalorder %s1522_s13, %s1522_s13 }
  0x62   : > { %p1525_p2 = pnand %p1523_p0, %p1826_p8  ;;  %p1532_p4 = por %p1531_p9, %p1530_p7 }
  0x64   : > { %p1526_p5 = pneg %p1525_p2 }
  0x66   : > { %p1533_p10 = pnand %p1532_p4, %p1526_p5 }
  0x68   : > { %1536 = shalt.err (!%p1533_p10)
}
  0x69   : > { %s2301_s23 = smov 8   ;;  %s2302_s28 = smov 128  }
  0x6a   : > { %1320 = dma.hbm_to_vmem [thread:$0]  (!%p1810_p6), %s2285_s2, 256, %s235_s16, [#allocation8], %s2302_s28, %s2302_s28, %s2301_s23  }
  0x6b   : > { %s1537_s17 = scalar_lea.hbm %s2287_s4, 256 }
  0x6c   : > { %p1538_p1 = scmp.ne.s32.totalorder %s2287_s4, %s1537_s17  ;;  %p1544_p12 = scmp.lt.u32.totalorder %s1537_s17, %s2287_s4 }
  0x6e   : > { %p1540_p3 = pnand %p1538_p1, %p1826_p8 }
  0x70   : > { %p1541_p11 = pneg %p1540_p3 }
  0x72   : > { %p1546_p13 = pnand %p1544_p12, %p1541_p11 }
  0x74   : > { %1549 = shalt.err (!%p1546_p13)
}
  0x75   : > { %s1550_s11 = scalar_lea.vmem %s261_s18, 256  ;;  %p1558_p7 = scmp.lt.s32.totalorder %s261_s18, %s261_s18 }
  0x76   : > { %p1551_p0 = scmp.ne.s32.totalorder %s261_s18, %s1550_s11  ;;  %p1559_p9 = scmp.lt.s32.totalorder %s1550_s11, %s1550_s11 }
  0x78   : > { %p1553_p2 = pnand %p1551_p0, %p1826_p8  ;;  %p1560_p4 = por %p1559_p9, %p1558_p7 }
  0x7a   : > { %p1554_p5 = pneg %p1553_p2 }
  0x7c   : > { %p1561_p10 = pnand %p1560_p4, %p1554_p5 }
  0x7e   : > { %1564 = shalt.err (!%p1561_p10)
}
  0x7f   : > { %1326 = dma.hbm_to_vmem [thread:$0]  (!%p1810_p6), %s2287_s4, 256, %s261_s18, [#allocation11], %s2302_s28, %s2302_s28, %s2301_s23  }
  0x80   : > { %s1712_s22 = smov [#allocation15]   ;;  %s1565_s17 = scalar_lea.hbm %s2289_s6, 1024 }
  0x81   : > { %s286_s10 = sshll.u32 %s1712_s22, 4  ;;  %p1566_p1 = scmp.ne.s32.totalorder %s2289_s6, %s1565_s17  ;;  %s287_s10 = int_to_ptr.vmem [resolvable:$true] %s286_s10 }
  0x82   : > { %p1572_p12 = scmp.lt.u32.totalorder %s1565_s17, %s2289_s6 }
  0x83   : > { %p1568_p3 = pnand %p1566_p1, %p1826_p8 }
  0x85   : > { %p1569_p11 = pneg %p1568_p3 }
  0x87   : > { %p1574_p13 = pnand %p1572_p12, %p1569_p11 }
  0x89   : > { %1577 = shalt.err (!%p1574_p13)
}
  0x8a   : > { %s1578_s18 = scalar_lea.vmem %s287_s10, 1024  ;;  %p1586_p7 = scmp.lt.s32.totalorder %s287_s10, %s287_s10 }
  0x8b   : > { %p1579_p0 = scmp.ne.s32.totalorder %s287_s10, %s1578_s18  ;;  %p1587_p9 = scmp.lt.s32.totalorder %s1578_s18, %s1578_s18 }
  0x8d   : > { %p1581_p2 = pnand %p1579_p0, %p1826_p8  ;;  %p1588_p4 = por %p1587_p9, %p1586_p7 }
  0x8f   : > { %p1582_p5 = pneg %p1581_p2 }
  0x91   : > { %p1589_p10 = pnand %p1588_p4, %p1582_p5 }
  0x93   : > { %1592 = shalt.err (!%p1589_p10)
}
  0x94   : > { %1332 = dma.hbm_to_vmem [thread:$0]  (!%p1810_p6), %s2289_s6, 1024, %s287_s10, [#allocation14], %s2302_s28, %s2302_s28, %s2301_s23  }
  0x95   : > { %s1244_s9 = sadd.s32 4294967294, %s1701_s27   ;;  %s1963_s19 = sadd.s32 1, %s1701_s27  }
  0x96   : > { %s30_s13 = ssub.s32 %s1701_s27, %s1963_s19  ;;  %s33_s22 = sadd.s32 1, %s1697_s26 }
  0x97   : > { %p31_p8 = scmp.eq.s32.totalorder %s30_s13, 0  ;;  %p40_p1 = scmp.ne.s32.totalorder %s1697_s26, %s1693_s25 }
  0x98   : > { %p41_p3 = scmp.eq.s32.totalorder %s1701_s27, 0  ;;  %p46_p11 = scmp.ne.s32.totalorder %s1693_s25, %s1689_s24 }
  0x99   : > { %s1974_s14 = scalar_select %p31_p8, %s1697_s26, %s33_s22  }
  0x9a   : > { %p1976_p12 = por %p41_p3, %p40_p1  ;;  %p2304_p13 = scmp.eq.s32.totalorder %s1794_s30, 0 }
  0x9b   : > { %p196_p0 = scmp.eq.s32.totalorder %s1794_s30, 1  ;;  %p202_p2 = scmp.eq.s32.totalorder %s1244_s9, 1 }
  0x9c   : > { %p1982_p6 = por %p2304_p13, %p46_p11  ;;  %p1347_p5 = scmp.lt.s32.totalorder %s1701_s27, 2 }
  0x9d   : > { %s300_s28 = sand.u32 1, %s1697_s26   ;;  %p1989_p7 = por %p196_p0, %p40_p1 }
  0x9e   : > { %p1993_p9 = por %p202_p2, %p46_p11  ;;  %s1253_s20 = sshll.u32 %s300_s28, 7 }
  0x9f   : > { %s2306_s10 = scalar_select %p1989_p7, 1, 0 }
  0xa0   : > { %s2307_s17 = scalar_select %p1993_p9, 1, 0 }
  0xa1   : > { %s1283_s21 = sshll.u32 %s1701_s27, 11  ;;  %s304_s11 = scalar_lea.vmem [#allocation4], %s1253_s20 }
  0xa2   : > { %s2001_s18 = scalar_lea.hbm %s2283_s0, %s1283_s21  ;;  %s311_s16 = sshll.u32 %s304_s11, 4  ;;  %s2003_s16 = int_to_ptr.vmem [resolvable:$true] %s311_s16 }
  0xa3   : > { %p2007_p4 = pnand %p1347_p5, %p1976_p12  ;;  %s2011_s13 = scalar_lea.sflag [#allocation5], %s300_s28 }
  0xa4   : > { %s1593_s22 = scalar_lea.hbm %s2001_s18, 2048  ;;  %s1598_s15 = scalar_lea.hbm %s2283_s0, 4096 }
  0xa5   : > { %p1594_p10 = scmp.ne.s32.totalorder %s2001_s18, %s1593_s22  ;;  %p1595_p8 = pneg %p2007_p4 }
  0xa6   : > { %p1599_p11 = scmp.lt.u32.totalorder %s2001_s18, %s2283_s0  ;;  %p1600_p12 = scmp.lt.u32.totalorder %s1598_s15, %s1593_s22 }
  0xa7   : > { %p1596_p1 = pnand %p1595_p8, %p1594_p10  ;;  %p1602_p0 = scmp.lt.u32.totalorder %s1593_s22, %s2001_s18 }
  0xa8   : > { %p1601_p13 = por %p1600_p12, %p1599_p11 }
  0xa9   : > { %p1597_p3 = pneg %p1596_p1 }
  0xaa   : > { %p1603_p2 = por %p1602_p0, %p1601_p13 }
  0xac   : > { %p1604_p5 = pnand %p1603_p2, %p1597_p3 }
  0xae   : > { %1607 = shalt.err (!%p1604_p5)
}
  0xaf   : > { %s1608_s28 = scalar_lea.vmem %s2003_s16, 2048  ;;  %s1713_s11 = smov [#allocation4]  }
  0xb0   : > { %p1609_p10 = scmp.ne.s32.totalorder %s2003_s16, %s1608_s28  ;;  %s1613_s20 = sshll.u32 %s1713_s11, 4  ;;  %s1614_s20 = int_to_ptr.vmem [resolvable:$false] %s1613_s20 }
  0xb1   : > { %s1615_s21 = scalar_lea.vmem %s1614_s20, 4096  ;;  %p1616_p7 = scmp.lt.s32.totalorder %s2003_s16, %s1614_s20 }
  0xb2   : > { %p1611_p1 = pnand %p1609_p10, %p1595_p8  ;;  %p1617_p11 = scmp.lt.s32.totalorder %s1615_s21, %s1608_s28 }
  0xb4   : > { %p1612_p9 = pneg %p1611_p1  ;;  %p1618_p12 = por %p1617_p11, %p1616_p7 }
  0xb6   : > { %p1619_p13 = pnand %p1618_p12, %p1612_p9 }
  0xb8   : > { %1622 = shalt.err (!%p1619_p13)
}
  0xb9   : > { %s1714_s22 = smov 256   ;;  %s1715_s15 = smov 16  }
  0xba   : > { %1336 = dma.hbm_to_vmem [thread:$0]  (!%p2007_p4), %s2001_s18, 2048, %s2003_s16, %s2011_s13, %s1714_s22, %s1714_s22, %s1715_s15  }
  0xbb   : > { %p2309_p8 = scmp.ne.s32.totalorder %s2298_s8, 0 }
  0xbc   : > { %s2042_s29 = sand.u32 (!%p2309_p8), 1, %s1693_s25  }
  0xbd   : > { %323 = sbr.rel (%p2309_p8) target bundleno = 1221 (0x4c5), region = 48  ;;  %s1257_s12 = sshll.u32 (!%p2309_p8), %s2042_s29, 7 }
  0xbe   : > { %s326_s28 = scalar_lea.sflag (!%p2309_p8), [#allocation5], %s2042_s29  ;;  %s2048_s11 = scalar_lea.vmem (!%p2309_p8), [#allocation4], %s1257_s12 }
  0xc4   : > { %1668 = dma.done.wait (%p1982_p6), %s326_s28, 2048  }
  0xc5   : > { %1670 = vsyncadd (%p1982_p6), %s326_s28, 4294965248  ;;  %p2310_p7 = scmp.eq.s32.totalorder %s1794_s30, 0 }
  0xc7   : > { %1672 = dma.done.wait (%p2310_p7), [#allocation8], 384   ;;  %p2311_p9 = pmov %p2310_p7 }
  0xc8   : > { %p2312_p4 = pmov %p2310_p7 }
  0xc9   : > { %1674 = vsyncadd (%p2311_p9), [#allocation8], 4294966912 }
  0xca   : > { %1676 = dma.done.wait (%p2312_p4), [#allocation11], 512   ;;  %p2313_p3 = pmov %p2312_p4 }
  0xcc   : > { %1678 = vsyncadd (%p2313_p3), [#allocation11], 4294966784  ;;  %p2314_p0 = pmov %p2313_p3 }
  0xce   : > { %1680 = dma.done.wait (%p2314_p0), [#allocation14], 1536   ;;  %p2315_p2 = pmov %p2314_p0 }
  0xcf   : > { %v1716_v0 = vmov 0   ;;  %v2070_v1 = vld [vmem:[%s2048_s11 + $0x8] sm:$0xff]  ;;  %v2073_v2 = vld [vmem:[%s2048_s11 + $0x18] sm:$0xff]  ;;  %v2076_v3 = vld [vmem:[%s2048_s11] sm:$0xff]  ;;  %v502_v26 = vlaneseq  ;;  %vm430_vm0 = vcmask 523264   ;;  %s1717_s8 = smov 2  }
  0xd0   : > { %1682 = vsyncadd (%p2315_p2), [#allocation14], 4294965760  ;;  %466 = vmatprep.mubr.bf16.mxu0 %v1716_v0  ;;  %1415 = vset.pattern.permute.xlu0 %v1716_v0  ;;  %v406_v4 = vpack.c.bf16 %v2073_v2, %v2070_v1  ;;  %v2081_v5 = vld [vmem:[%s2048_s11 + $0x10] sm:$0xff]  ;;  %v2084_v6 = vld [vmem:[%s2048_s11 + $0x28] sm:$0xff]  ;;  %s1718_s23 = smov 16   ;;  %s1719_s18 = smov 18  }
  0xd1   : > { %1416 = vset.pattern.permute.xlu1 %v1716_v0  ;;  %v2087_v7 = vld [vmem:[%s2048_s11 + $0x38] sm:$0xff]  ;;  %v405_v8 = vpack.c.bf16 %v2081_v5, %v2076_v3  ;;  %v2094_v10 = vld [vmem:[%s2048_s11 + $0x20] sm:$0xff]  ;;  %v2097_v11 = vld [vmem:[%s2048_s11 + $0x30] sm:$0xff]  ;;  %v503_v28 = vand.u32 127, %v502_v26  ;;  %v546_v29 = vshrl.u32 %v502_v26, 7  ;;  %s1720_s16 = smov 32  }
  0xd2   : > { %v408_v9 = vpack.c.bf16 %v2087_v7, %v2084_v6  ;;  %v2100_v12 = vld [vmem:[%s2048_s11 + $0x48] sm:$0xff]  ;;  %434 = vmatprep.subr.bf16.mxu0 %v406_v4  ;;  %v2103_v13 = vld [vmem:[%s2048_s11 + $0x58] sm:$0xff]  ;;  %v407_v14 = vpack.c.bf16 %v2097_v11, %v2094_v10  ;;  %v2108_v15 = vld [vmem:[%s2048_s11 + $0x40] sm:$0xff]  ;;  %s1721_s9 = smov 34   ;;  %vm481_vm7 = vcmask 138240   ;;  %vm483_vm8 = vcmask 277640  }
  0xd3   : > { %435 = vmatpush1.bf16.msra.mxu0 %v405_v8  ;;  %v2111_v16 = vld [vmem:[%s2048_s11 + $0x50] sm:$0xff]  ;;  %v410_v17 = vpack.c.bf16 %v2103_v13, %v2100_v12  ;;  %v2116_v18 = vld [vmem:[%s2048_s11 + $0x68] sm:$0xff]  ;;  %v2119_v19 = vld [vmem:[%s2048_s11 + $0x78] sm:$0xff]  ;;  %v504_v30 = vadd.s32 128, %v503_v28  ;;  %v509_v31 = vand.u32 15, %v503_v28  ;;  %v547_v34 = vsub.s32 0, %v546_v29 }
  0xd4   : > { %436 = vmatprep.subr.bf16.mxu0 %v408_v9  ;;  %v413_v20 = vld [vmem:[#allocation9] sm:$0xff]  ;;  %v414_v21 = vld [vmem:[#allocation9 + $0x8] sm:$0xff]  ;;  %v2122_v22 = vld [vmem:[%s2048_s11 + $0x60] sm:$0xff]  ;;  %v409_v24 = vpack.c.bf16 %v2111_v16, %v2108_v15  ;;  %v412_v25 = vpack.c.bf16 %v2119_v19, %v2116_v18  ;;  %482 = vst.msk [vmem:[#allocation2] sm:$0xff] %vm481_vm7, %v1716_v0  ;;  %s1722_s13 = smov 17   ;;  %v551_v55 = vsub.s32 4, %v546_v29 }
  0xd5   : > { %v2125_v23 = vld [vmem:[%s2048_s11 + $0x70] sm:$0xff]  ;;  %417 = vperm.xlu0 %1415, %v413_v20   ;;  %v1417_v32 = vld [vmem:[#allocation7] sm:$0xff]   ;;  %v516_v33 = vand.u32 15, %v504_v30  ;;  %vm535_vm1 = vcmp.lt.s32.totalorder %v509_v31, 15  ;;  %vm529_vm4 = vcmp.gt.s32.totalorder %v509_v31, 0  ;;  %484 = vst.msk [vmem:[#allocation2 + $0x10] sm:$0xff] %vm483_vm8, %v1716_v0 }
  0xd6   : > { %v411_v27 = vpack.c.bf16 %v2125_v23, %v2122_v22  ;;  %vm498_vm9 = vcmask 1047688   ;;  %s1723_s20 = smov 127   ;;  %s1724_s21 = smov 112   ;;  %vm595_vm15 = vcmask 15360   ;;  %vm707_vm8 = vcmask 261120  }
  0xd7   : > { %437 = vmatpush1.bf16.msra.mxu0 %v407_v14  ;;  %vm536_vm2 = vcmp.lt.s32.totalorder %v516_v33, 15  ;;  %vm530_vm5 = vcmp.gt.s32.totalorder %v516_v33, 0  ;;  %s1725_s22 = smov 111   ;;  %s1726_s15 = smov 126  }
  0xd8   : > { %438 = vmatprep.subr.bf16.mxu0 %v410_v17  ;;  %vm581_vm3 = vmpackc.low %vm536_vm2, %vm535_vm1  ;;  %vm626_vm1 = vcmask 130048   ;;  %s1727_s28 = smov 110   ;;  %s1728_s11 = smov 96  }
  0xd9   : > { %422 = vperm.xlu0 %1415, %v414_v21   ;;  %v582_v35 = vsel %vm581_vm3, 65537, %v1716_v0  ;;  %vm543_vm6 = vmpackc.low %vm530_vm5, %vm529_vm4  ;;  %vm676_vm5 = vcmask 146432   ;;  %p2316_p5 = scmp.ne.s32.totalorder %s2306_s10, 0 }
  0xda   : > { %v586_v36 = vrot.slane %v582_v35, %v547_v34  ;;  %v544_v37 = vsel %vm543_vm6, 65537, %v1716_v0  ;;  %v590_v56 = vrot.slane %v582_v35, %v551_v55 }
  0xdb   : > { %439 = vmatpush1.bf16.msra.mxu0 %v409_v24  ;;  %v548_v38 = vrot.slane %v544_v37, %v547_v34  ;;  %v552_v57 = vrot.slane %v544_v37, %v551_v55  ;;  %v886_v55 = vld [vmem:[#allocation15 + $0x18] sm:$0xff] }
  0xdc   : > { %440 = vmatprep.subr.bf16.mxu0 %v412_v25 }
  0xdd   : > { %591 = vrot.lane.b32.xlu0 %v586_v36, %s1717_s8  ;;  %vm554_vm10 = vcmp.ne.s16.totalorder %v552_v57, 0  ;;  %vm553_vm11 = vcmp.ne.s16.totalorder %v548_v38, 0 }
  0xdf   : > { %441 = vmatpush1.bf16.msra.mxu0 %v411_v27 }
  0xe1   : > { %622 = vrot.lane.b32.xlu0 %v548_v38, %s1718_s23 }
  0xe2   : > { %1266 = vmatmul.mubr.msk.bf16.vlgmr.msra.gmra.mrb[0].mxu0 %vm430_vm0, %v1417_v32 }
  0xe3   : > { %995 = vmatprep.mubr.bf16.mxu0 %v1716_v0 }
  0xe5   : > { %672 = vrot.lane.b32.xlu0 %v586_v36, %s1719_s18 }
  0xe9   : > { %703 = vrot.lane.b32.xlu0 %v548_v38, %s1720_s16 }
  0xed   : > { %753 = vrot.lane.b32.xlu0 %v586_v36, %s1721_s9 }
 0x154   : > { %v418_v39 = vpop.permute.xlu0 %417 }
 0x158   : > { %v423_v43 = vpop.permute.xlu0 %422 }
 0x15c   : > { %v592_v59 = vpop.permute.xlu0 %591 }
 0x15d   : > { %vm597_vm13 = vcmp.ne.s16.totalorder %v592_v59, 0 }
 0x160   : > { %v623_v62 = vpop.permute.xlu0 %622 }
 0x161   : > { %vm628_vm12 = vcmp.ne.s16.totalorder %v623_v62, 0 }
 0x164   : > { %v673_v25 = vpop.permute.xlu0 %672 }
 0x165   : > { %vm678_vm2 = vcmp.ne.s16.totalorder %v673_v25, 0 }
 0x168   : > { %v704_v34 = vpop.permute.xlu0 %703 }
 0x1b5   : > { %v468_v40 = vpop.f32.mrb[0].mxu0 }
 0x1b6   : > { %v469_v41 = vadd.f32 %v468_v40, %v418_v39  ;;  %v470_v42 = vpop.f32.mrb[1].mxu0 }
 0x1b7   : > { %v471_v44 = vadd.f32 %v470_v42, %v418_v39  ;;  %v472_v45 = vpop.f32.mrb[2].mxu0  ;;  %v754_v42 = vpop.permute.xlu0 %753 }
 0x1b8   : > { %v473_v46 = vadd.f32 %v472_v45, %v423_v43  ;;  %v474_v47 = vpop.f32.mrb[3].mxu0  ;;  %v477_v49 = vmax.f32 %v469_v41, 0.0 }
 0x1b9   : > { %v475_v48 = vadd.f32 %v474_v47, %v423_v43  ;;  %v478_v51 = vmax.f32 %v471_v44, 0.0  ;;  %v1420_v43 = vld [vmem:[#allocation10 + $0x4] ss:$8 sps:$4 sm:$0xff]   ;;  %v801_v47 = vld [vmem:[#allocation12] sm:$0xff] }
 0x1ba   : > { %v479_v50 = vmax.f32 %v473_v46, 0.0  ;;  %1269 = vmatprep.mubr.msk.bf16.mxu1 %vm626_vm1, %v1420_v43 }
 0x1bb   : > { %v480_v52 = vmax.f32 %v475_v48, 0.0 }
 0x1bc   : > { %v485_v53 = vpack.c.bf16 %v479_v50, %v477_v49  ;;  %v883_v49 = vld [vmem:[#allocation15] sm:$0xff]  ;;  %v885_v50 = vld [vmem:[#allocation15 + $0x10] sm:$0xff] }
 0x1bd   : > { %v486_v54 = vpack.c.bf16 %v480_v52, %v478_v51  ;;  %v887_v51 = vld [vmem:[#allocation15 + $0x20] sm:$0xff]  ;;  %v889_v52 = vld [vmem:[#allocation15 + $0x30] sm:$0xff] }
 0x1be   : > { %489 = vrot.lane.b32.xlu1 %v485_v53, %s1722_s13  ;;  %v802_v53 = vld [vmem:[#allocation12 + $0x8] sm:$0xff] }
 0x1c2   : > { %491 = vrot.lane.b32.xlu1 %v486_v54, %s1722_s13  ;;  %v884_v54 = vld [vmem:[#allocation15 + $0x8] sm:$0xff] }
 0x1c6   : > { %593 = vrot.lane.b32.xlu1 %v590_v56, %s1717_s8  ;;  %s1729_s8 = smov 95  }
 0x1ca   : > { %624 = vrot.lane.b32.xlu1 %v552_v57, %s1718_s23 }
 0x1ce   : > { %674 = vrot.lane.b32.xlu1 %v590_v56, %s1719_s18  ;;  %s1730_s18 = smov 94  }
 0x1d2   : > { %705 = vrot.lane.b32.xlu1 %v552_v57, %s1720_s16  ;;  %v890_v57 = vld [vmem:[#allocation15 + $0x38] sm:$0xff]  ;;  %s2201_s16 = scalar_lea.vmem [#allocation16], %s1257_s12  ;;  %s1284_s12 = sshll.u32 %s1794_s30, 11 }
 0x1d3   : > { %s1101_s30 = scalar_lea.sflag [#allocation6], %s2042_s29 }
 0x1d6   : > { %755 = vrot.lane.b32.xlu1 %v590_v56, %s1721_s9  ;;  %v888_v56 = vld [vmem:[#allocation15 + $0x28] sm:$0xff]  ;;  %s1114_s9 = sshll.u32 %s2201_s16, 4  ;;  %s2236_s9 = int_to_ptr.vmem [resolvable:$true] %s1114_s9 }
 0x230   : > { %v490_v58 = vpop.permute.xlu1 %489 }
 0x231   : > { %499 = vst.msk [vmem:[#allocation2] sm:$0xff] %vm498_vm9, %v490_v58  ;;  %vm709_vm9 = vcmp.ne.s16.totalorder %v704_v34, 0 }
 0x234   : > { %v492_v60 = vpop.permute.xlu1 %491 }
 0x235   : > { %v2150_v61 = vsel %vm481_vm7, %v490_v58, %v492_v60  ;;  %501 = vst.msk [vmem:[#allocation2 + $0x10] sm:$0xff] %vm481_vm7, %v492_v60 }
 0x236   : > { %1285 = vmatprep.subr.msk.bf16.mxu1 %vm554_vm10, %v2150_v61 }
 0x238   : > { %v594_v63 = vpop.permute.xlu1 %593  ;;  %v2154_v4 = vld [vmem:[#allocation2] sm:$0xff] }
 0x239   : > { %565 = vrot.lane.b32.xlu0 %v2154_v4, %s1723_s20  ;;  %v555_v8 = vsel %vm553_vm11, %v2154_v4, 0  ;;  %v631_v9 = vsel %vm628_vm12, %v2154_v4, 0  ;;  %v600_v20 = vsel %vm597_vm13, %v2154_v4, 0  ;;  %vm599_vm0 = vcmp.ne.s16.totalorder %v594_v63, 0 }
 0x23a   : > { %827 = vmatpush1.bf16.msra.mxu1 %v555_v8  ;;  %v596_v24 = vsel %vm595_vm15, %v592_v59, %v594_v63  ;;  %v681_v29 = vsel %vm678_vm2, %v2154_v4, 0  ;;  %v712_v38 = vsel %vm709_vm9, %v2154_v4, 0  ;;  %vm757_vm12 = vcmask 277504  }
 0x23b   : > { %vm598_vm3 = vcmp.ne.s16.totalorder %v596_v24, 0  ;;  %vm759_vm15 = vcmp.ne.s16.totalorder %v754_v42, 0  ;;  %vm612_vm2 = vcmask 1031168  }
 0x23c   : > { %v2159_v14 = vld [vmem:[#allocation2 + $0x10] sm:$0xff]  ;;  %v625_v17 = vpop.permute.xlu1 %624  ;;  %v601_v30 = vsel %vm598_vm3, %v2150_v61, 0  ;;  %v762_v48 = vsel %vm759_vm15, %v2154_v4, 0  ;;  %vm643_vm3 = vcmask 916480  }
 0x23d   : > { %637 = vrot.lane.b32.xlu0 %v631_v9, %s1724_s21  ;;  %569 = vrot.lane.b32.xlu1 %v2159_v14, %s1723_s20  ;;  %vm630_vm14 = vcmp.ne.s16.totalorder %v625_v17, 0  ;;  %v602_v27 = vsel %vm599_vm0, %v2159_v14, 0  ;;  %v627_v28 = vsel %vm626_vm1, %v623_v62, %v625_v17  ;;  %vm571_vm0 = vcmask 1039360  }
 0x23e   : > { %v633_v21 = vsel %vm630_vm14, %v2159_v14, 0  ;;  %vm629_vm4 = vcmp.ne.s16.totalorder %v627_v28, 0 }
 0x23f   : > { %v632_v32 = vsel %vm629_vm4, %v2150_v61, 0  ;;  %vm662_vm4 = vcmask 908288  }
 0x240   : > { %v675_v26 = vpop.permute.xlu1 %674 }
 0x241   : > { %660 = vrot.lane.b32.xlu0 %v2159_v14, %s1725_s22  ;;  %606 = vrot.lane.b32.xlu1 %v600_v20, %s1726_s15  ;;  %vm680_vm6 = vcmp.ne.s16.totalorder %v675_v26, 0  ;;  %v677_v33 = vsel %vm676_vm5, %v673_v25, %v675_v26  ;;  %vm693_vm5 = vcmask 900096  }
 0x242   : > { %v683_v35 = vsel %vm680_vm6, %v2159_v14, 0  ;;  %vm679_vm10 = vcmp.ne.s16.totalorder %v677_v33, 0  ;;  %vm724_vm6 = vcmask 785408  }
 0x243   : > { %v682_v39 = vsel %vm679_vm10, %v2150_v61, 0 }
 0x244   : > { %v706_v31 = vpop.permute.xlu1 %705 }
 0x245   : > { %567 = vrot.lane.b32.xlu0 %v2150_v61, %s1723_s20  ;;  %641 = vrot.lane.b32.xlu1 %v633_v21, %s1724_s21  ;;  %vm711_vm7 = vcmp.ne.s16.totalorder %v706_v31, 0  ;;  %v708_v37 = vsel %vm707_vm8, %v704_v34, %v706_v31  ;;  %vm774_vm8 = vcmask 769024  }
 0x246   : > { %v714_v36 = vsel %vm711_vm7, %v2159_v14, 0  ;;  %vm710_vm11 = vcmp.ne.s16.totalorder %v708_v37, 0  ;;  %vm743_vm7 = vcmask 777216  }
 0x247   : > { %v713_v41 = vsel %vm710_vm11, %v2150_v61, 0 }
 0x248   : > { %v756_v40 = vpop.permute.xlu1 %755 }
 0x249   : > { %610 = vrot.lane.b32.xlu0 %v602_v27, %s1726_s15  ;;  %658 = vrot.lane.b32.xlu1 %v2150_v61, %s1725_s22  ;;  %v758_v44 = vsel %vm757_vm12, %v754_v42, %v756_v40  ;;  %vm761_vm14 = vcmp.ne.s16.totalorder %v756_v40, 0 }
 0x24a   : > { %vm760_vm13 = vcmp.ne.s16.totalorder %v758_v44, 0  ;;  %v764_v45 = vsel %vm761_vm14, %v2159_v14, 0 }
 0x24b   : > { %v763_v46 = vsel %vm760_vm13, %v2150_v61, 0 }
 0x24d   : > { %687 = vrot.lane.b32.xlu0 %v681_v29, %s1727_s28  ;;  %608 = vrot.lane.b32.xlu1 %v601_v30, %s1726_s15  ;;  %s1731_s15 = smov [#allocation16]  }
 0x251   : > { %656 = vrot.lane.b32.xlu1 %v2154_v4, %s1725_s22  ;;  %639 = vrot.lane.b32.xlu0 %v632_v32, %s1724_s21  ;;  %s2233_s21 = scalar_lea.hbm %s2290_s7, %s1284_s12  ;;  %s1623_s22 = scalar_lea.vmem %s2236_s9, 2048 }
 0x252   : > { %p1624_p6 = scmp.ne.s32.totalorder %s2236_s9, %s1623_s22 }
 0x254   : > { %p1625_p10 = pnand %p1624_p6, %p2316_p5 }
 0x255   : > { %691 = vrot.lane.b32.xlu1 %v683_v35, %s1727_s28  ;;  %722 = vrot.lane.b32.xlu0 %v714_v36, %s1728_s11 }
 0x256   : > { %p1626_p1 = pneg %p1625_p10 }
 0x259   : > { %718 = vrot.lane.b32.xlu1 %v712_v38, %s1728_s11  ;;  %689 = vrot.lane.b32.xlu0 %v682_v39, %s1727_s28  ;;  %s1627_s28 = sshll.u32 %s1731_s15, 4  ;;  %s1628_s28 = int_to_ptr.vmem [resolvable:$false] %s1627_s28 }
 0x25a   : > { %p1630_p11 = scmp.lt.s32.totalorder %s2236_s9, %s1628_s28 }
 0x25d   : > { %739 = vrot.lane.b32.xlu0 %v2150_v61, %s1729_s8  ;;  %720 = vrot.lane.b32.xlu1 %v713_v41, %s1728_s11  ;;  %s1629_s11 = scalar_lea.vmem %s1628_s28, 4096 }
 0x25e   : > { %p1631_p12 = scmp.lt.s32.totalorder %s1629_s11, %s1623_s22 }
 0x260   : > { %p1632_p13 = por %p1631_p12, %p1630_p11 }
 0x261   : > { %737 = vrot.lane.b32.xlu0 %v2154_v4, %s1729_s8  ;;  %741 = vrot.lane.b32.xlu1 %v2159_v14, %s1729_s8 }
 0x262   : > { %p1633_p8 = pnand %p1632_p13, %p1626_p1 }
 0x265   : > { %772 = vrot.lane.b32.xlu0 %v764_v45, %s1730_s18  ;;  %770 = vrot.lane.b32.xlu1 %v763_v46, %s1730_s18 }
 0x269   : > { %805 = vperm.xlu0 %1415, %v801_v47   ;;  %768 = vrot.lane.b32.xlu1 %v762_v48, %s1730_s18 }
 0x26d   : > { %893 = vperm.xlu0 %1415, %v883_v49   ;;  %810 = vperm.xlu1 %1416, %v802_v53  }
 0x271   : > { %903 = vperm.xlu0 %1415, %v885_v50   ;;  %898 = vperm.xlu1 %1416, %v884_v54  }
 0x275   : > { %913 = vperm.xlu0 %1415, %v887_v51   ;;  %908 = vperm.xlu1 %1416, %v886_v55   ;;  %v1418_v51 = vld [vmem:[#allocation10] ss:$8 sps:$4 sm:$0xff]  }
 0x279   : > { %923 = vperm.xlu0 %1415, %v889_v52   ;;  %918 = vperm.xlu1 %1416, %v888_v56  }
 0x27d   : > { %928 = vperm.xlu1 %1416, %v890_v57  }
 0x2ab   : > { %v566_v58 = vpop.permute.xlu0 %565 }
 0x2af   : > { %v638_v59 = vpop.permute.xlu0 %637  ;;  %v570_v60 = vpop.permute.xlu1 %569 }
 0x2b3   : > { %v661_v61 = vpop.permute.xlu0 %660  ;;  %v607_v62 = vpop.permute.xlu1 %606 }
 0x2b7   : > { %v568_v63 = vpop.permute.xlu0 %567  ;;  %v642_v4 = vpop.permute.xlu1 %641 }
 0x2b8   : > { %v573_v8 = vsel %vm571_vm0, %v568_v63, %v570_v60  ;;  %v572_v9 = vsel %vm571_vm0, %v566_v58, %v568_v63 }
 0x2b9   : > { %828 = vmatprep.subr.bf16.mxu1 %v573_v8 }
 0x2ba   : > { %829 = vmatpush1.bf16.msra.mxu1 %v572_v9 }
 0x2bb   : > { %v611_v14 = vpop.permute.xlu0 %610  ;;  %v659_v17 = vpop.permute.xlu1 %658 }
 0x2bc   : > { %v664_v30 = vsel %vm662_vm4, %v659_v17, %v661_v61 }
 0x2bf   : > { %v688_v20 = vpop.permute.xlu0 %687  ;;  %v609_v21 = vpop.permute.xlu1 %608 }
 0x2c0   : > { %v614_v24 = vsel %vm612_vm2, %v609_v21, %v611_v14  ;;  %v613_v25 = vsel %vm612_vm2, %v607_v62, %v609_v21  ;;  %v1423_v21 = vld [vmem:[#allocation13 + $0x10] sm:$0xff]  }
 0x2c1   : > { %830 = vmatprep.subr.bf16.mxu1 %v614_v24  ;;  %v1424_v24 = vld [vmem:[#allocation13 + $0x18] sm:$0xff]  }
 0x2c2   : > { %831 = vmatpush1.bf16.msra.mxu1 %v613_v25 }
 0x2c3   : > { %v640_v26 = vpop.permute.xlu0 %639  ;;  %v657_v27 = vpop.permute.xlu1 %656 }
 0x2c4   : > { %v645_v28 = vsel %vm643_vm3, %v640_v26, %v642_v4  ;;  %v644_v29 = vsel %vm643_vm3, %v638_v59, %v640_v26  ;;  %v663_v33 = vsel %vm662_vm4, %v657_v27, %v659_v17  ;;  %v1421_v17 = vld [vmem:[#allocation13] sm:$0xff]  }
 0x2c5   : > { %832 = vmatprep.subr.bf16.mxu1 %v645_v28 }
 0x2c6   : > { %833 = vmatpush1.bf16.msra.mxu1 %v644_v29 }
 0x2c7   : > { %v723_v31 = vpop.permute.xlu0 %722  ;;  %834 = vmatprep.subr.bf16.mxu1 %v664_v30  ;;  %v692_v32 = vpop.permute.xlu1 %691 }
 0x2ca   : > { %835 = vmatpush1.bf16.msra.mxu1 %v663_v33 }
 0x2cb   : > { %v690_v34 = vpop.permute.xlu0 %689  ;;  %v719_v35 = vpop.permute.xlu1 %718 }
 0x2cc   : > { %v695_v36 = vsel %vm693_vm5, %v690_v34, %v692_v32  ;;  %v694_v37 = vsel %vm693_vm5, %v688_v20, %v690_v34  ;;  %v1422_v20 = vld [vmem:[#allocation13 + $0x8] sm:$0xff]  }
 0x2cd   : > { %836 = vmatprep.subr.bf16.mxu1 %v695_v36 }
 0x2ce   : > { %837 = vmatpush1.bf16.msra.mxu1 %v694_v37 }
 0x2cf   : > { %v740_v38 = vpop.permute.xlu0 %739  ;;  %v721_v39 = vpop.permute.xlu1 %720 }
 0x2d0   : > { %v726_v40 = vsel %vm724_vm6, %v721_v39, %v723_v31  ;;  %v725_v41 = vsel %vm724_vm6, %v719_v35, %v721_v39 }
 0x2d1   : > { %838 = vmatprep.subr.bf16.mxu1 %v726_v40 }
 0x2d2   : > { %839 = vmatpush1.bf16.msra.mxu1 %v725_v41 }
 0x2d3   : > { %v738_v42 = vpop.permute.xlu0 %737  ;;  %v742_v43 = vpop.permute.xlu1 %741 }
 0x2d4   : > { %v745_v44 = vsel %vm743_vm7, %v740_v38, %v742_v43  ;;  %v744_v45 = vsel %vm743_vm7, %v738_v42, %v740_v38 }
 0x2d5   : > { %840 = vmatprep.subr.bf16.mxu1 %v745_v44 }
 0x2d6   : > { %841 = vmatpush1.bf16.msra.mxu1 %v744_v45 }
 0x2d7   : > { %v773_v46 = vpop.permute.xlu0 %772  ;;  %v771_v47 = vpop.permute.xlu1 %770 }
 0x2d8   : > { %v776_v48 = vsel %vm774_vm8, %v771_v47, %v773_v46 }
 0x2d9   : > { %842 = vmatprep.subr.bf16.mxu1 %v776_v48 }
 0x2db   : > { %v769_v49 = vpop.permute.xlu1 %768 }
 0x2dc   : > { %v775_v50 = vsel %vm774_vm8, %v769_v49, %v771_v47 }
 0x2dd   : > { %843 = vmatpush1.bf16.msra.mxu1 %v775_v50 }
 0x2e0   : > { %859 = vmatmul.mubr.bf16.vlgmr.msra.gmra.mrb[0].mxu1 %v1418_v51 }
 0x2e8   : > { %v806_v52 = vpop.permute.xlu0 %805 }
 0x2ec   : > { %v811_v56 = vpop.permute.xlu1 %810  ;;  %v894_v25 = vpop.permute.xlu0 %893 }
 0x2f0   : > { %v899_v29 = vpop.permute.xlu1 %898  ;;  %v904_v40 = vpop.permute.xlu0 %903 }
 0x2f4   : > { %v909_v43 = vpop.permute.xlu1 %908 }
 0x3b3   : > { %v860_v53 = vpop.f32.mrb[0].mxu1 }
 0x3b4   : > { %v861_v54 = vadd.f32 %v860_v53, %v806_v52  ;;  %v862_v55 = vpop.f32.mrb[1].mxu1 }
 0x3b5   : > { %v863_v57 = vadd.f32 %v862_v55, %v806_v52  ;;  %v864_v58 = vpop.f32.mrb[2].mxu1  ;;  %v914_v55 = vpop.permute.xlu0 %913 }
 0x3b6   : > { %v865_v59 = vadd.f32 %v864_v58, %v811_v56  ;;  %v866_v60 = vpop.f32.mrb[3].mxu1  ;;  %v869_v62 = vmax.f32 %v861_v54, 0.0 }
 0x3b7   : > { %v867_v61 = vadd.f32 %v866_v60, %v811_v56  ;;  %v870_v4 = vmax.f32 %v863_v57, 0.0 }
 0x3b8   : > { %v871_v63 = vmax.f32 %v865_v59, 0.0  ;;  %v919_v59 = vpop.permute.xlu1 %918 }
 0x3b9   : > { %v872_v8 = vmax.f32 %v867_v61, 0.0 }
 0x3ba   : > { %v881_v9 = vpack.c.bf16 %v871_v63, %v869_v62 }
 0x3bb   : > { %v882_v14 = vpack.c.bf16 %v872_v8, %v870_v4 }
 0x3bd   : > { %963 = vmatprep.subr.bf16.mxu0 %v882_v14 }
 0x3be   : > { %964 = vmatpush1.bf16.msra.mxu0 %v881_v9 }
 0x3c1   : > { %1274 = vmatmul.mubr.msk.bf16.vlgmr.msra.gmra.mrb[4].mxu0 %vm626_vm1, %v1421_v17 }
 0x3c2   : > { %1005 = vmatprep.mubr.bf16.mxu0 %v1716_v0 }
 0x3c9   : > { %1275 = vmatmul.mubr.msk.bf16.gmra.mrb[8].mxu0 %vm626_vm1, %v1422_v20  ;;  %v924_v20 = vpop.permute.xlu0 %923 }
 0x3ca   : > { %1015 = vmatprep.mubr.bf16.mxu0 %v1716_v0 }
 0x3d1   : > { %1276 = vmatmul.mubr.msk.bf16.gmra.mrb[12].mxu0 %vm626_vm1, %v1423_v21 }
 0x3d2   : > { %1025 = vmatprep.mubr.bf16.mxu0 %v1716_v0 }
 0x3d9   : > { %1277 = vmatmul.mubr.msk.bf16.gmra.mrb[16].mxu0 %vm626_vm1, %v1424_v24 }
 0x494   : > { %v997_v26 = vpop.f32.mrb[4].mxu0 }
 0x495   : > { %v998_v27 = vadd.f32 %v997_v26, %v894_v25  ;;  %v999_v28 = vpop.f32.mrb[5].mxu0 }
 0x496   : > { %v1000_v30 = vadd.f32 %v999_v28, %v894_v25  ;;  %v1001_v31 = vpop.f32.mrb[6].mxu0 }
 0x497   : > { %v1052_v32 = vadd.f32 %v998_v27, %v2076_v3  ;;  %v1002_v33 = vadd.f32 %v1001_v31, %v899_v29  ;;  %v1003_v34 = vpop.f32.mrb[7].mxu0 }
 0x498   : > { %v1053_v35 = vadd.f32 %v1000_v30, %v2070_v1  ;;  %v1004_v36 = vadd.f32 %v1003_v34, %v899_v29 }
 0x499   : > { %v1068_v37 = vmax.f32 %v1052_v32, 0.0  ;;  %v1054_v0 = vadd.f32 %v1002_v33, %v2081_v5 }
 0x49a   : > { %v1069_v38 = vmax.f32 %v1053_v35, 0.0  ;;  %v1055_v39 = vadd.f32 %v1004_v36, %v2073_v2 }
 0x49b   : > { %1084 = vst [vmem:[%s2201_s16] sm:$0xff] %v1068_v37  ;;  %v1070_v3 = vmax.f32 %v1054_v0, 0.0 }
 0x49c   : > { %1085 = vst [vmem:[%s2201_s16 + $0x8] sm:$0xff] %v1069_v38  ;;  %v1071_v41 = vmax.f32 %v1055_v39, 0.0  ;;  %v1007_v1 = vpop.f32.mrb[8].mxu0 }
 0x49d   : > { %1086 = vst [vmem:[%s2201_s16 + $0x10] sm:$0xff] %v1070_v3  ;;  %v1008_v42 = vadd.f32 %v1007_v1, %v904_v40  ;;  %v1009_v5 = vpop.f32.mrb[9].mxu0 }
 0x49e   : > { %1087 = vst [vmem:[%s2201_s16 + $0x18] sm:$0xff] %v1071_v41  ;;  %v1010_v2 = vadd.f32 %v1009_v5, %v904_v40  ;;  %v1011_v44 = vpop.f32.mrb[10].mxu0 }
 0x49f   : > { %v1056_v45 = vadd.f32 %v1008_v42, %v2094_v10  ;;  %v1012_v46 = vadd.f32 %v1011_v44, %v909_v43  ;;  %v1013_v47 = vpop.f32.mrb[11].mxu0 }
 0x4a0   : > { %v1057_v48 = vadd.f32 %v1010_v2, %v2084_v6  ;;  %v1014_v49 = vadd.f32 %v1013_v47, %v909_v43 }
 0x4a1   : > { %v1072_v50 = vmax.f32 %v1056_v45, 0.0  ;;  %v1058_v51 = vadd.f32 %v1012_v46, %v2097_v11 }
 0x4a2   : > { %v1073_v52 = vmax.f32 %v1057_v48, 0.0  ;;  %v1059_v53 = vadd.f32 %v1014_v49, %v2087_v7 }
 0x4a3   : > { %1088 = vst [vmem:[%s2201_s16 + $0x20] sm:$0xff] %v1072_v50  ;;  %v1074_v54 = vmax.f32 %v1058_v51, 0.0 }
 0x4a4   : > { %1089 = vst [vmem:[%s2201_s16 + $0x28] sm:$0xff] %v1073_v52  ;;  %v1075_v56 = vmax.f32 %v1059_v53, 0.0  ;;  %v1017_v57 = vpop.f32.mrb[12].mxu0 }
 0x4a5   : > { %1090 = vst [vmem:[%s2201_s16 + $0x30] sm:$0xff] %v1074_v54  ;;  %v1018_v10 = vadd.f32 %v1017_v57, %v914_v55  ;;  %v1019_v58 = vpop.f32.mrb[13].mxu0 }
 0x4a6   : > { %1091 = vst [vmem:[%s2201_s16 + $0x38] sm:$0xff] %v1075_v56  ;;  %v1020_v6 = vadd.f32 %v1019_v58, %v914_v55  ;;  %v1021_v60 = vpop.f32.mrb[14].mxu0 }
 0x4a7   : > { %v1060_v11 = vadd.f32 %v1018_v10, %v2108_v15  ;;  %v1022_v61 = vadd.f32 %v1021_v60, %v919_v59  ;;  %v1023_v7 = vpop.f32.mrb[15].mxu0 }
 0x4a8   : > { %v1061_v62 = vadd.f32 %v1020_v6, %v2100_v12  ;;  %v1024_v63 = vadd.f32 %v1023_v7, %v919_v59  ;;  %v929_v12 = vpop.permute.xlu1 %928 }
 0x4a9   : > { %v1076_v4 = vmax.f32 %v1060_v11, 0.0  ;;  %v1062_v8 = vadd.f32 %v1022_v61, %v2111_v16 }
 0x4aa   : > { %v1077_v9 = vmax.f32 %v1061_v62, 0.0  ;;  %v1063_v14 = vadd.f32 %v1024_v63, %v2103_v13 }
 0x4ab   : > { %1092 = vst [vmem:[%s2201_s16 + $0x40] sm:$0xff] %v1076_v4  ;;  %v1078_v17 = vmax.f32 %v1062_v8, 0.0 }
 0x4ac   : > { %1093 = vst [vmem:[%s2201_s16 + $0x48] sm:$0xff] %v1077_v9  ;;  %v1079_v21 = vmax.f32 %v1063_v14, 0.0  ;;  %v1027_v24 = vpop.f32.mrb[16].mxu0 }
 0x4ad   : > { %1094 = vst [vmem:[%s2201_s16 + $0x50] sm:$0xff] %v1078_v17  ;;  %v1028_v15 = vadd.f32 %v1027_v24, %v924_v20  ;;  %v1029_v25 = vpop.f32.mrb[17].mxu0 }
 0x4ae   : > { %1095 = vst [vmem:[%s2201_s16 + $0x58] sm:$0xff] %v1079_v21  ;;  %v1030_v26 = vadd.f32 %v1029_v25, %v924_v20  ;;  %v1031_v16 = vpop.f32.mrb[18].mxu0 }
 0x4af   : > { %v1064_v27 = vadd.f32 %v1028_v15, %v2122_v22  ;;  %v1032_v13 = vadd.f32 %v1031_v16, %v929_v12  ;;  %v1033_v28 = vpop.f32.mrb[19].mxu0 }
 0x4b0   : > { %v1065_v29 = vadd.f32 %v1030_v26, %v2116_v18  ;;  %v1034_v30 = vadd.f32 %v1033_v28, %v929_v12 }
 0x4b1   : > { %v1080_v31 = vmax.f32 %v1064_v27, 0.0  ;;  %v1066_v32 = vadd.f32 %v1032_v13, %v2125_v23 }
 0x4b2   : > { %v1081_v33 = vmax.f32 %v1065_v29, 0.0  ;;  %v1067_v34 = vadd.f32 %v1034_v30, %v2119_v19 }
 0x4b3   : > { %1096 = vst [vmem:[%s2201_s16 + $0x60] sm:$0xff] %v1080_v31  ;;  %v1082_v35 = vmax.f32 %v1066_v32, 0.0 }
 0x4b4   : > { %1097 = vst [vmem:[%s2201_s16 + $0x68] sm:$0xff] %v1081_v33  ;;  %v1083_v18 = vmax.f32 %v1067_v34, 0.0 }
 0x4b5   : > { %1098 = vst [vmem:[%s2201_s16 + $0x70] sm:$0xff] %v1082_v35 }
 0x4b6   : > { %1099 = vst [vmem:[%s2201_s16 + $0x78] sm:$0xff] %v1083_v18 }
 0x4b7   : > { %1636 = shalt.err (!%p1633_p8)
}
 0x4b8   : > { %s1637_s8 = scalar_lea.hbm %s2233_s21, 2048  ;;  %s1641_s12 = scalar_lea.hbm %s2290_s7, 4096 }
 0x4b9   : > { %p1638_p7 = scmp.ne.s32.totalorder %s2233_s21, %s1637_s8  ;;  %p1642_p3 = scmp.lt.u32.totalorder %s2233_s21, %s2290_s7 }
 0x4ba   : > { %p1643_p0 = scmp.lt.u32.totalorder %s1641_s12, %s1637_s8  ;;  %p1645_p6 = scmp.lt.u32.totalorder %s1637_s8, %s2233_s21 }
 0x4bb   : > { %p1639_p9 = pnand %p1638_p7, %p2316_p5 }
 0x4bc   : > { %p1644_p2 = por %p1643_p0, %p1642_p3 }
 0x4bd   : > { %p1640_p4 = pneg %p1639_p9 }
 0x4be   : > { %p1646_p10 = por %p1645_p6, %p1644_p2 }
 0x4c0   : > { %p1647_p1 = pnand %p1646_p10, %p1640_p4 }
 0x4c2   : > { %1650 = shalt.err (!%p1647_p1)
}
 0x4c3   : > { %s1732_s22 = smov 256  }
 0x4c4   : > { %1312 = dma.vmem_to_hbm [thread:$0]  (%p2316_p5), %s2236_s9, 2048, %s2233_s21, %s1101_s30, %s1732_s22, %s1732_s22, %s1718_s23  }
 0x4c5 PF: > { %s1129_s15 = sand.u32 1, %s1689_s24   ;;  %p2317_p11 = scmp.ne.s32.totalorder %s2307_s17, 0 }
 0x4c6   : > { %p2318_p12 = scmp.ge.s32.totalorder %s1701_s27, 2  ;;  %s1130_s28 = scalar_lea.sflag [#allocation6], %s1129_s15 }
 0x4c8   : > { %p1338_p13 = pnand %p2318_p12, %p2317_p11 }
 0x4ca   : > { %1684 = dma.done.wait (!%p1338_p13), %s1130_s28, 2048  }
 0x4cb   : > { %1686 = vsyncadd (!%p1338_p13), %s1130_s28, 4294965248  ;;  %p23_p8 = scmp.ge.s32.totalorder %s1963_s19, 4   ;;  %s2319_s24 = smov %s1693_s25 }
 0x4cc   : > { %s2320_s25 = smov %s1697_s26  ;;  %s2321_s26 = smov %s1974_s14 }
 0x4cd   : > { %s2322_s27 = smov %s1963_s19  ;;  %25 = sbr.rel (!%p23_p8) target bundleno = 8 (0x8), region = 117 }
 0x4d4   :  { %1135 = vsyncpa [#allocation5], 1 }
 0x4d5   :  { %1137 = vsyncpa [#allocation5 + $0x1], 1 }
 0x4d6   :  { %1138 = vsyncpa [#allocation8], 1 }
 0x4d7   :  { %1139 = vsyncpa [#allocation11], 1 }
 0x4d8   :  { %1140 = vsyncpa [#allocation14], 1 }
 0x4d9   :  { %1141 = vsyncpa [#allocation6], 1 }
 0x4da   :  { %1143 = vsyncpa [#allocation6 + $0x1], 1 }

</bundles_post_ra>
